<compile_context>
chip_gen: v7x
topology: tpu7x:2x2x1
jax: 0.10.0
libtpu: 0.0.40
codegen_flags: <defaults>
</compile_context>

<pallas_src>
import functools

import jax
import jax.numpy as jnp
from jax.experimental import pallas as pl
from jax.experimental.pallas import tpu as pltpu


def _round_up(a, b):
    return (a + b - 1) // b * b


def _shortcut_kernel(x_ref, o_ref, *, pad):
    """x_ref: (tb, C, tho, 2*W)   -- each lane-row is [even input row | odd input row]
       o_ref: (tb, C+2*pad, tho*Wo) -- lane-dense flattened spatial output."""
    tb, chans, tho, w2 = x_ref.shape
    w = w2 // 2

    xv = x_ref[...]                                   # whole contiguous block
    rows = xv[..., :w]                                # even input rows -> (tb, C, tho, W)
    if w % 2:                                         # odd W: one zero lane so pairs are exact
        rows = jnp.pad(rows, ((0, 0), (0, 0), (0, 0), (0, 1)))
    # Even-column select without a stride-2 lane access: view columns as (even, odd)
    # pairs and keep element 0 of each pair (XLU de-interleave, proven to lower).
    cols = rows.reshape(tb, chans, tho, -1, 2)[..., 0]   # (tb, C, tho, Wo)
    wo = cols.shape[-1]
    y = cols.reshape(tb, chans, tho * wo)             # lane-dense flattened spatial

    # Build the channel-padded tile in-register and issue ONE aligned full-tile store
    # (avoids sublane-misaligned partial stores when `pad` isn't a multiple of 8/16).
    if pad:
        y = jnp.pad(y, ((0, 0), (pad, pad), (0, 0)))
    o_ref[...] = y.astype(o_ref.dtype)


def lambda_layer(x, pad):
    """Option-A shortcut: pad(x[:, :, ::2, ::2], channel-pad=pad on each side)."""
    B, C, H, W = x.shape
    Ho, Wo = (H + 1) // 2, (W + 1) // 2      # ceil -> matches PyTorch x[:, :, ::2, ::2]
    Cout = C + 2 * pad
    dtype = x.dtype
    itemsize = jnp.dtype(dtype).itemsize

    # TODO(synk): odd-H inputs take one wrapper-level pad row (extra HBM pass); odd
    # spatial sizes never occur for the option-A shortcut in models.py.
    if H % 2:
        x = jnp.pad(x, ((0, 0), (0, 0), (0, 1), (0, 0)))
    # Free (metadata-only) reshape: merge each (even, odd) row pair into one lane-row so
    # the input DMA is fully contiguous per (batch, channel) and lane-dense.
    xv = x.reshape(B, C, Ho, 2 * W)

    # ---- generation- and dtype-aware tile sizing -------------------------------------
    try:
        vmem_cap = int(getattr(pltpu.get_tpu_info(), "vmem_capacity_bytes", 64 << 20))
    except Exception:  # pragma: no cover - conservative default (v7x-sized)
        vmem_cap = 64 << 20
    sub = max(8, (8 * 4) // itemsize)        # packed sublane tile: 8 f32 / 16 bf16 / 32 i8
    in_b = C * _round_up(Ho, sub) * _round_up(2 * W, 128) * itemsize
    out_b = _round_up(Cout, sub) * _round_up(Ho * Wo, 128) * itemsize
    per_b = in_b + out_b                     # padded VMEM footprint per batch element
    block_cap = vmem_cap // 8

    tb = max(1, B // 8)                      # aim for >= 8 grid steps (4 per v7x core)
    tb_floor = max(1, (1 << 20) // per_b)    # ...but keep blocks >= ~1 MiB when possible
    if tb < tb_floor and B // tb_floor >= 4:
        tb = tb_floor
    tb = min(tb, max(1, block_cap // per_b), B)
    while B % tb:                            # make tb a divisor of B
        tb -= 1
    steps = B // tb

    # If batch alone gives too few pipeline steps, also split the output-row dim.  Only
    # splits that keep the output block a multiple of 128 lanes, the input block 8-sublane
    # aligned, and per-channel HBM runs >= 512 B are considered.
    nh = 1
    if steps < 8:
        for cand in range(2, Ho + 1):
            if Ho % cand:
                continue
            tho_c = Ho // cand
            if tho_c % 8 or (tho_c * Wo) % 128 or tho_c * 2 * W * itemsize < 512:
                continue
            nh = cand
            if steps * cand >= 8:
                break
    tho = Ho // nh

    in_blk = tb * C * _round_up(tho, sub) * _round_up(2 * W, 128) * itemsize
    out_blk = tb * _round_up(Cout, sub) * _round_up(tho * Wo, 128) * itemsize
    vmem_limit = int(min(max(2 * (in_blk + out_blk) + (4 << 20), 16 << 20), vmem_cap // 2))

    bytes_accessed = int(xv.size + B * Cout * Ho * Wo) * itemsize

    out_flat = pl.pallas_call(
        functools.partial(_shortcut_kernel, pad=pad),
        out_shape=jax.ShapeDtypeStruct((B, Cout, Ho * Wo), dtype),
        grid=(B // tb, nh),
        in_specs=[pl.BlockSpec((tb, C, tho, 2 * W), lambda b, h: (b, 0, h, 0))],
        out_specs=pl.BlockSpec((tb, Cout, tho * Wo), lambda b, h: (b, 0, h)),
        compiler_params=pltpu.CompilerParams(
            dimension_semantics=("parallel", "parallel"),
            vmem_limit_bytes=vmem_limit),
        cost_estimate=pl.CostEstimate(flops=0, transcendentals=0,
                                      bytes_accessed=bytes_accessed),
    )(xv)
    # Free reshape back to NCHW.
    return out_flat.reshape(B, Cout, Ho, Wo)


def _reference(x, pad):
    """Pure-JAX reference of the PyTorch lambda: F.pad(x[:, :, ::2, ::2], (0,0,0,0,pad,pad))."""
    return jnp.pad(x[:, :, ::2, ::2], ((0, 0), (pad, pad), (0, 0), (0, 0)))


if __name__ == "__main__":
    key = jax.random.PRNGKey(0)

    # 1) Small even-sized case (required small shape).
    B, C, H, W = 2, 4, 16, 16
    planes = 2 * C                 # the option-A shortcut doubles the channel count
    pad = planes // 4              # -> 2 zero channels on each side
    x = jax.random.normal(key, (B, C, H, W), dtype=jnp.float32)
    out = jax.block_until_ready(lambda_layer(x, pad))
    ref = _reference(x, pad)
    assert out.shape == ref.shape == (B, C + 2 * pad, H // 2, W // 2), out.shape
    assert jnp.allclose(out, ref), "mismatch vs reference (even spatial size)"

    # 2) Odd spatial size: output must be ceil(H/2) x ceil(W/2), like PyTorch's ::2.
    x_odd = jax.random.normal(jax.random.PRNGKey(1), (2, 4, 15, 13), dtype=jnp.float32)
    out_odd = jax.block_until_ready(lambda_layer(x_odd, pad))
    ref_odd = _reference(x_odd, pad)
    assert out_odd.shape == ref_odd.shape, (out_odd.shape, ref_odd.shape)
    assert jnp.allclose(out_odd, ref_odd), "mismatch vs reference (odd spatial size)"

    # 3) CIFAR-ResNet-like stage transition (16->32 planes, 32x32 -> 16x16); exercises
    #    the output-row grid split path.
    x_big = jax.random.normal(jax.random.PRNGKey(2), (4, 16, 32, 32), dtype=jnp.float32)
    out_big = jax.block_until_ready(lambda_layer(x_big, 8))
    ref_big = _reference(x_big, 8)
    assert out_big.shape == ref_big.shape, (out_big.shape, ref_big.shape)
    assert jnp.allclose(out_big, ref_big), "mismatch vs reference (CIFAR stage shape)"

    print("KERNEL_OK")
</pallas_src>

<mosaic_0001>
module attributes {stable_mosaic.version = 11 : i64} {
  func.func @_shortcut_kernel(%arg0: i32, %arg1: i32, %arg2: memref<1x4x8x32xf32, #tpu.memory_space<vmem>>, %arg3: memref<1x8x64xf32, #tpu.memory_space<vmem>>) attributes {dimension_semantics = [#tpu.dimension_semantics<parallel>, #tpu.dimension_semantics<parallel>], iteration_bounds = array<i64: 2, 1>, scalar_prefetch = 0 : i64, scratch_operands = 0 : i64, tpu.core_type = #tpu.core_type<tc>, window_params = [{transform_indices = @transform_0, window_bounds = array<i64: 1, 4, 8, 32>}, {transform_indices = @transform_1, window_bounds = array<i64: 1, 8, 64>}]} {
    %c0 = arith.constant 0 : index
    %c0_0 = arith.constant 0 : index
    %c0_1 = arith.constant 0 : index
    %c0_2 = arith.constant 0 : index
    %0 = vector.load %arg2[%c0, %c0_0, %c0_1, %c0_2] : memref<1x4x8x32xf32, #tpu.memory_space<vmem>>, vector<1x4x8x32xf32>
    %1 = vector.extract_strided_slice %0 {offsets = [0, 0, 0, 0], sizes = [1, 4, 8, 16], strides = [1, 1, 1, 1]} : vector<1x4x8x32xf32> to vector<1x4x8x16xf32>
    %2 = vector.shape_cast %1 : vector<1x4x8x16xf32> to vector<1x4x8x8x2xf32>
    %3 = vector.extract_strided_slice %2 {offsets = [0, 0, 0, 0, 0], sizes = [1, 4, 8, 8, 1], strides = [1, 1, 1, 1, 1]} : vector<1x4x8x8x2xf32> to vector<1x4x8x8x1xf32>
    %4 = vector.shape_cast %3 : vector<1x4x8x8x1xf32> to vector<1x4x8x8xf32>
    %5 = vector.shape_cast %4 : vector<1x4x8x8xf32> to vector<1x4x64xf32>
    %c0_i32 = arith.constant 0 : i32
    %6 = arith.sitofp %c0_i32 : i32 to f32
    %7 = vector.broadcast %6 : f32 to vector<1x2x64xf32>
    %8 = tpu.concatenate %7, %5 in 1 : vector<1x2x64xf32>, vector<1x4x64xf32> -> vector<1x6x64xf32>
    %9 = vector.broadcast %6 : f32 to vector<1x2x64xf32>
    %10 = tpu.concatenate %8, %9 in 1 : vector<1x6x64xf32>, vector<1x2x64xf32> -> vector<1x8x64xf32>
    %c0_3 = arith.constant 0 : index
    %c0_4 = arith.constant 0 : index
    %c0_5 = arith.constant 0 : index
    %11 = vector.load %arg3[%c0_3, %c0_4, %c0_5] : memref<1x8x64xf32, #tpu.memory_space<vmem>>, vector<1x8x64xf32>
    tpu.vector_store %arg3[%c0_3, %c0_4, %c0_5], %10 {strides = array<i32>} : memref<1x8x64xf32, #tpu.memory_space<vmem>>, vector<1x8x64xf32>,
    return
  }
  func.func @transform_0(%arg0: i32, %arg1: i32) -> (i32, i32, i32, i32) {
    %c0_i32 = arith.constant 0 : i32
    %c0_i32_0 = arith.constant 0 : i32
    %c0_i32_1 = arith.constant 0 : i32
    return %arg0, %c0_i32, %arg1, %c0_i32_0 : i32, i32, i32, i32
  }
  func.func @transform_1(%arg0: i32, %arg1: i32) -> (i32, i32, i32) {
    %c0_i32 = arith.constant 0 : i32
    %c0_i32_0 = arith.constant 0 : i32
    return %arg0, %c0_i32, %arg1 : i32, i32, i32
  }
}

</mosaic_0001>

<bundles_post_ra>
// kernel: tpu_custom_call.1
= control target key start
LH: loop header
LB: loop body
LE: loop exit
PB: predicated region body
PF: predicated region fallthrough
CT: control target
= control target key end

     0   :  { %6 = vsyncpa [#allocation3], 0  ;;  %s1942_s0 = inlined_call_operand.hbm [shape: f32[2,4,8,32], index: 0, kind: input, shape index: {}]   ;;  %s1943_s1 = inlined_call_operand.hbm [shape: f32[2,8,64], index: 1, kind: output, shape index: {}]  }
   0x1   :  { %8 = vsyncpa [#allocation3 + $0x1], 0 }
   0x2   :  { %9 = vsyncpa [#allocation4], 0 }
   0x3   :  { %11 = vsyncpa [#allocation4 + $0x1], 0  ;;  %s1426_s6 = smov 0   ;;  %s1428_s7 = smov 0  }
   0x4   :  { %s1430_s8 = smov 0   ;;  %s1432_s9 = smov 0  }
   0x5   :  { %s1434_s10 = smov 0   ;;  %s1436_s11 = smov 0  }
   0x6 LB: > { %s1197_s12 = sadd.s32 4294967295, %s1400_s11   ;;  %s1198_s13 = sadd.s32 4294967294, %s1400_s11   ;;  %s1400_s11 = sphi %s1436_s11, %s17_s11   ;;  %s1396_s10 = sphi %s1434_s10, %s1958_s10   ;;  %s1392_s9 = sphi %s1432_s9, %s1957_s9   ;;  %s1388_s8 = sphi %s1430_s8, %s1956_s8   ;;  %s1384_s7 = sphi %s1428_s7, %s1955_s7   ;;  %s1380_s6 = sphi %s1426_s6, %s1954_s6  }
   0x7   : > { %s29_s14 = sadd.s32 1, %s1396_s10  ;;  %s38_s15 = sadd.s32 1, %s1388_s8 }
   0x8   : > { %p31_p0 = scmp.ge.s32.totalorder %s29_s14, 2  ;;  %p45_p1 = scmp.ne.s32.totalorder %s1388_s8, %s1384_s7 }
   0x9   : > { %p46_p2 = scmp.eq.s32.totalorder %s1400_s11, 0  ;;  %p51_p3 = scmp.ne.s32.totalorder %s1384_s7, %s1380_s6 }
   0xa   : > { %s1960_s14 = smov (%p31_p0, %s29_s14), 0  ;;  %p52_p5 = scmp.eq.s32.totalorder %s1197_s12, 0 }
   0xb   : > { %p1467_p4 = por %p46_p2, %p45_p1  ;;  %s33_s17 = ssub.s32 %s1396_s10, %s1960_s14 }
   0xc   : > { %p77_p6 = scmp.eq.s32.totalorder %s1197_s12, 1  ;;  %p36_p7 = scmp.eq.s32.totalorder %s33_s17, 0 }
   0xd   : > { %p1473_p8 = por %p52_p5, %p51_p3  ;;  %p83_p10 = scmp.eq.s32.totalorder %s1198_s13, 1 }
   0xe   : > { %p1477_p9 = por %p77_p6, %p45_p1  ;;  %p1224_p13 = scmp.lt.s32.totalorder %s1400_s11, 2 }
   0xf   : > { %s1482_s20 = scalar_select %p36_p7, %s1388_s8, %s38_s15  }
  0x10   : > { %s1947_s19 = scalar_select %p1477_p9, 1, 0 }
  0x11   : > { %p1484_p11 = por %p83_p10, %p51_p3  ;;  %s103_s22 = sand.u32 1, %s1388_s8  }
  0x12   : > { %s1201_s23 = sshll.u32 %s103_s22, 5  ;;  %s1211_s24 = sshll.u32 %s1396_s10, 9 }
  0x13   : > { %s1948_s21 = scalar_select %p1484_p11, 1, 0 }
  0x14   : > { %s1495_s27 = scalar_lea.hbm %s1942_s0, %s1211_s24  ;;  %s107_s28 = scalar_lea.vmem [#allocation2], %s1201_s23 }
  0x15   : > { %s115_s29 = sshll.u32 %s107_s28, 4  ;;  %p1501_p0 = pnand %p1224_p13, %p1467_p4  ;;  %s1497_s29 = int_to_ptr.vmem [resolvable:$true] %s115_s29 }
  0x16   : > { %s1506_s2 = scalar_lea.sflag [#allocation3], %s103_s22  ;;  %s1288_s3 = scalar_lea.hbm %s1495_s27, 512 }
  0x17   : > { %p1289_p2 = scmp.ne.s32.totalorder %s1495_s27, %s1288_s3  ;;  %p1290_p3 = pneg %p1501_p0 }
  0x18   : > { %s1293_s12 = scalar_lea.hbm %s1942_s0, 1024  ;;  %p1294_p4 = scmp.lt.u32.totalorder %s1495_s27, %s1942_s0 }
  0x19   : > { %p1291_p5 = pnand %p1290_p3, %p1289_p2  ;;  %p1295_p7 = scmp.lt.u32.totalorder %s1293_s12, %s1288_s3 }
  0x1a   : > { %p1297_p13 = scmp.lt.u32.totalorder %s1288_s3, %s1495_s27 }
  0x1b   : > { %p1292_p6 = pneg %p1291_p5  ;;  %p1296_p10 = por %p1295_p7, %p1294_p4 }
  0x1d   : > { %p1298_p12 = por %p1297_p13, %p1296_p10 }
  0x1f   : > { %p1299_p1 = pnand %p1298_p12, %p1292_p6 }
  0x21   : > { %1302 = shalt.err (!%p1299_p1)
}
  0x22   : > { %s1303_s16 = scalar_lea.vmem %s1497_s29, 512  ;;  %s1402_s17 = smov [#allocation2]  }
  0x23   : > { %p1304_p2 = scmp.ne.s32.totalorder %s1497_s29, %s1303_s16  ;;  %s1308_s22 = sshll.u32 %s1402_s17, 4  ;;  %s1309_s22 = int_to_ptr.vmem [resolvable:$false] %s1308_s22 }
  0x24   : > { %s1310_s23 = scalar_lea.vmem %s1309_s22, 1024  ;;  %p1311_p9 = scmp.lt.s32.totalorder %s1497_s29, %s1309_s22 }
  0x25   : > { %p1306_p5 = pnand %p1304_p2, %p1290_p3  ;;  %p1312_p4 = scmp.lt.s32.totalorder %s1310_s23, %s1303_s16 }
  0x27   : > { %p1307_p11 = pneg %p1306_p5  ;;  %p1313_p7 = por %p1312_p4, %p1311_p9 }
  0x29   : > { %p1314_p10 = pnand %p1313_p7, %p1307_p11 }
  0x2b   : > { %1317 = shalt.err (!%p1314_p10)
}
  0x2c   : > { %s1403_s24 = smov 128   ;;  %s1404_s25 = smov 8  }
  0x2d   : > { %1219 = dma.hbm_to_vmem [thread:$0]  (!%p1501_p0), %s1495_s27, 512, %s1497_s29, %s1506_s2, %s1403_s24, %s1403_s24, %s1404_s25  }
  0x2e   : > { %p123_p12 = scmp.lt.s32.totalorder %s1400_s11, 3  ;;  %p1950_p1 = scmp.ge.s32.totalorder %s1400_s11, 1 }
  0x30   : > { %p124_p3 = pnand %p1950_p1, %p123_p12 }
  0x31   : > { %s1538_s26 = sand.u32 (!%p124_p3), 1, %s1384_s7  }
  0x32   : > { %127 = sbr.rel (%p124_p3) target bundleno = 433 (0x1b1), region = 24  ;;  %s1205_s28 = sshll.u32 (!%p124_p3), %s1538_s26, 5 }
  0x33   : > { %s130_s3 = scalar_lea.sflag (!%p124_p3), [#allocation3], %s1538_s26  ;;  %s133_s4 = scalar_lea.vmem (!%p124_p3), [#allocation2], %s1205_s28 }
  0x39   : > { %1371 = dma.done.wait (%p1473_p8), %s130_s3, 512  }
  0x3a   : > { %1373 = vsyncadd (%p1473_p8), %s130_s3, 4294966784  ;;  %v1546_v0 = vld [vmem:[%s133_s4 + $0x10] sm:$0xff]  ;;  %v1548_v1 = vld [vmem:[%s133_s4] sm:$0xff]  ;;  %s1405_s27 = smov 126   ;;  %s1406_s29 = smov 124   ;;  %v1411_v4 = vmov 0   ;;  %v249_v15 = vlaneseq }
  0x3b   : > { %164 = vrot.lane.b32.xlu1 %v1546_v0, %s1405_s27  ;;  %160 = vrot.lane.b32.xlu0 %v1548_v1, %s1405_s27  ;;  %v1552_v2 = vld [vmem:[%s133_s4 + $0x18] sm:$0xff]  ;;  %v1554_v3 = vld [vmem:[%s133_s4 + $0x8] sm:$0xff]  ;;  %s1407_s18 = smov 122   ;;  %s1408_s30 = smov 120   ;;  %v1413_v13 = vmov 1983009808  }
  0x3c   : > { %s1409_s2 = smov 118   ;;  %s1410_s5 = smov 116   ;;  %1287 = vset.pattern.permute.xlu1 %v1411_v4  ;;  %1286 = vset.pattern.permute.xlu0 %v1411_v4  ;;  %v247_v14 = vunpack.c.l.s4 %v1413_v13  ;;  %v1597_v19 = vshrl.u32 %v249_v15, 7  ;;  %v1414_v37 = vmov 1934713408   ;;  %vm927_vm0 = vcmask 130112  }
  0x3d   : > { %s1412_s12 = smov 114   ;;  %v311_v38 = vunpack.c.l.s4 %v1414_v37  ;;  %vm934_vm1 = vcmask 195712   ;;  %vm941_vm2 = vcmask 261312   ;;  %vm948_vm3 = vcmask 326912   ;;  %s1206_s13 = sshll.u32 %s1538_s26, 3 }
  0x3e   : > { %v248_v18 = vunpack.c.0.s8 %v247_v14  ;;  %vm955_vm4 = vcmask 392512   ;;  %vm962_vm5 = vcmask 458112   ;;  %vm969_vm6 = vcmask 523712   ;;  %s1208_s15 = sshll.u32 %s1392_s9, 7  ;;  %s151_s16 = scalar_lea.vmem [#allocation5], %s1206_s13 }
  0x3f   : > { %166 = vrot.lane.b32.xlu1 %v1552_v2, %s1405_s27  ;;  %162 = vrot.lane.b32.xlu0 %v1554_v3, %s1405_s27  ;;  %v312_v44 = vunpack.c.0.s8 %v311_v38  ;;  %vm1088_vm7 = vcmask 1043459   ;;  %vm1090_vm8 = vcmask 1044484   ;;  %vm1092_vm9 = vcmask 1045509   ;;  %s1116_s17 = sshll.u32 %s151_s16, 4  ;;  %s1893_s24 = scalar_lea.hbm %s1943_s1, %s1208_s15  ;;  %s1895_s17 = int_to_ptr.vmem [resolvable:$true] %s1116_s17 }
  0x40   : > { %v1606_v23 = vsub.s32 %v248_v18, %v1597_v19  ;;  %vm1095_vm10 = vcmask 1041408   ;;  %vm1097_vm11 = vcmask 1045504   ;;  %vm1099_vm12 = vcmask 523264   ;;  %s1102_s9 = scalar_lea.sflag [#allocation4], %s1538_s26  ;;  %s1318_s25 = scalar_lea.vmem %s1895_s17, 128 }
  0x41   : > { %v1636_v53 = vsub.s32 %v312_v44, %v1597_v19  ;;  %p1319_p8 = scmp.ne.s32.totalorder %s1895_s17, %s1318_s25  ;;  %p1951_p9 = scmp.ne.s32.totalorder %s1947_s19, 0 }
  0x42   : > { %s1415_s28 = smov [#allocation5]  }
  0x43   : > { %174 = vrot.lane.b32.xlu1 %v1554_v3, %s1406_s29  ;;  %172 = vrot.lane.b32.xlu0 %v1548_v1, %s1406_s29  ;;  %p1320_p11 = pnand %p1319_p8, %p1951_p9  ;;  %s1322_s3 = sshll.u32 %s1415_s28, 4  ;;  %s1323_s3 = int_to_ptr.vmem [resolvable:$false] %s1322_s3 }
  0x44   : > { %s1324_s4 = scalar_lea.vmem %s1323_s3, 256  ;;  %p1325_p6 = scmp.lt.s32.totalorder %s1895_s17, %s1323_s3 }
  0x45   : > { %p1321_p0 = pneg %p1320_p11  ;;  %p1326_p13 = scmp.lt.s32.totalorder %s1324_s4, %s1318_s25 }
  0x47   : > { %178 = vrot.lane.b32.xlu1 %v1552_v2, %s1406_s29  ;;  %176 = vrot.lane.b32.xlu0 %v1546_v0, %s1406_s29  ;;  %p1327_p2 = por %p1326_p13, %p1325_p6 }
  0x49   : > { %p1328_p5 = pnand %p1327_p2, %p1321_p0 }
  0x4b   : > { %186 = vrot.lane.b32.xlu1 %v1554_v3, %s1407_s18  ;;  %184 = vrot.lane.b32.xlu0 %v1548_v1, %s1407_s18 }
  0x4f   : > { %190 = vrot.lane.b32.xlu1 %v1552_v2, %s1407_s18  ;;  %188 = vrot.lane.b32.xlu0 %v1546_v0, %s1407_s18 }
  0x53   : > { %198 = vrot.lane.b32.xlu1 %v1554_v3, %s1408_s30  ;;  %196 = vrot.lane.b32.xlu0 %v1548_v1, %s1408_s30 }
  0x57   : > { %202 = vrot.lane.b32.xlu1 %v1552_v2, %s1408_s30  ;;  %200 = vrot.lane.b32.xlu0 %v1546_v0, %s1408_s30 }
  0x5b   : > { %210 = vrot.lane.b32.xlu1 %v1554_v3, %s1409_s2  ;;  %208 = vrot.lane.b32.xlu0 %v1548_v1, %s1409_s2 }
  0x5f   : > { %222 = vrot.lane.b32.xlu1 %v1554_v3, %s1410_s5  ;;  %220 = vrot.lane.b32.xlu0 %v1548_v1, %s1410_s5 }
  0x63   : > { %234 = vrot.lane.b32.xlu1 %v1554_v3, %s1412_s12  ;;  %232 = vrot.lane.b32.xlu0 %v1548_v1, %s1412_s12 }
  0x67   : > { %224 = vrot.lane.b32.xlu1 %v1546_v0, %s1410_s5  ;;  %212 = vrot.lane.b32.xlu0 %v1546_v0, %s1409_s2 }
  0x6b   : > { %214 = vrot.lane.b32.xlu1 %v1552_v2, %s1409_s2  ;;  %236 = vrot.lane.b32.xlu0 %v1546_v0, %s1412_s12 }
  0x6f   : > { %238 = vrot.lane.b32.xlu1 %v1552_v2, %s1412_s12  ;;  %226 = vrot.lane.b32.xlu0 %v1552_v2, %s1410_s5 }
  0xad   : > { %v1582_v5 = vpop.permute.xlu1 %164  ;;  %v161_v6 = vpop.permute.xlu0 %160 }
  0xb1   : > { %v1584_v7 = vpop.permute.xlu1 %166  ;;  %v1586_v8 = vpop.permute.xlu0 %162 }
  0xb5   : > { %v1588_v9 = vpop.permute.xlu1 %174  ;;  %v173_v10 = vpop.permute.xlu0 %172 }
  0xb6   : > { %v244_v39 = vcombine.low %v1548_v1, %v173_v10  ;;  %v245_v54 = vcombine.high %v1548_v1, %v173_v10 }
  0xb8   : > { %v252_v46 = vrot.slane %v244_v39, %v1606_v23  ;;  %v259_v4 = vrot.slane %v245_v54, %v1606_v23 }
  0xb9   : > { %v1590_v11 = vpop.permute.xlu1 %178  ;;  %v1592_v12 = vpop.permute.xlu0 %176 }
  0xba   : > { %v517_v22 = vcombine.high %v1546_v0, %v1592_v12 }
  0xbc   : > { %v1616_v28 = vrot.slane %v517_v22, %v1606_v23  ;;  %v380_v22 = vcombine.low %v1554_v3, %v1588_v9 }
  0xbd   : > { %v1594_v16 = vpop.permute.xlu1 %186  ;;  %v185_v17 = vpop.permute.xlu0 %184 }
  0xbe   : > { %v260_v35 = vcombine.low %v161_v6, %v185_v17  ;;  %v261_v48 = vcombine.high %v161_v6, %v185_v17 }
  0xc0   : > { %v268_v41 = vrot.slane %v260_v35, %v1606_v23  ;;  %v275_v59 = vrot.slane %v261_v48, %v1606_v23 }
  0xc1   : > { %v1599_v20 = vpop.permute.xlu1 %190  ;;  %v1601_v21 = vpop.permute.xlu0 %188 }
  0xc2   : > { %v533_v24 = vcombine.high %v1582_v5, %v1601_v21  ;;  %v308_v50 = vcombine.low %v252_v46, %v268_v41  ;;  %v309_v60 = vcombine.high %v252_v46, %v268_v41 }
  0xc4   : > { %v1613_v27 = vrot.slane %v533_v24, %v1606_v23  ;;  %v316_v62 = vrot.slane %v308_v50, %v1636_v53  ;;  %v323_v35 = vrot.slane %v309_v60, %v1636_v53 }
  0xc5   : > { %v1610_v25 = vpop.permute.xlu1 %198  ;;  %v197_v26 = vpop.permute.xlu0 %196 }
  0xc6   : > { %v596_v29 = vcombine.low %v1616_v28, %v1613_v27  ;;  %v597_v30 = vcombine.high %v1616_v28, %v1613_v27 }
  0xc9   : > { %v1622_v31 = vpop.permute.xlu1 %202  ;;  %v1624_v32 = vpop.permute.xlu0 %200 }
  0xcd   : > { %v209_v33 = vpop.permute.xlu0 %208  ;;  %v1626_v34 = vpop.permute.xlu1 %210 }
  0xd1   : > { %v221_v36 = vpop.permute.xlu0 %220  ;;  %v1629_v40 = vpop.permute.xlu1 %222 }
  0xd2   : > { %v276_v42 = vcombine.low %v197_v26, %v221_v36  ;;  %v277_v51 = vcombine.high %v197_v26, %v221_v36  ;;  %v412_v6 = vcombine.low %v1610_v25, %v1629_v40  ;;  %v396_v26 = vcombine.low %v1586_v8, %v1594_v16 }
  0xd3   : > { %v413_v48 = vcombine.high %v1610_v25, %v1629_v40  ;;  %v532_v40 = vcombine.low %v1582_v5, %v1601_v21 }
  0xd4   : > { %v284_v52 = vrot.slane %v276_v42, %v1606_v23  ;;  %v291_v61 = vrot.slane %v277_v51, %v1606_v23  ;;  %v420_v36 = vrot.slane %v412_v6, %v1606_v23  ;;  %v404_v44 = vrot.slane %v396_v26, %v1606_v23 }
  0xd5   : > { %v233_v43 = vpop.permute.xlu0 %232  ;;  %v235_v55 = vpop.permute.xlu1 %234 }
  0xd6   : > { %v292_v45 = vcombine.low %v209_v33, %v233_v43  ;;  %v293_v47 = vcombine.high %v209_v33, %v233_v43  ;;  %v428_v1 = vcombine.low %v1626_v34, %v235_v55  ;;  %v324_v33 = vcombine.low %v259_v4, %v275_v59 }
  0xd7   : > { %v388_v43 = vrot.slane %v380_v22, %v1606_v23 }
  0xd8   : > { %v300_v49 = vrot.slane %v292_v45, %v1606_v23  ;;  %v307_v56 = vrot.slane %v293_v47, %v1606_v23  ;;  %v436_v37 = vrot.slane %v428_v1, %v1606_v23  ;;  %v325_v45 = vcombine.high %v259_v4, %v275_v59 }
  0xd9   : > { %v1648_v13 = vpop.permute.xlu0 %212  ;;  %v1653_v24 = vpop.permute.xlu1 %224  ;;  %v332_v47 = vrot.slane %v324_v33, %v1636_v53  ;;  %v397_v59 = vcombine.high %v1586_v8, %v1594_v16  ;;  %v444_v25 = vcombine.low %v388_v43, %v404_v44  ;;  %v516_v16 = vcombine.low %v1546_v0, %v1592_v12 }
  0xda   : > { %v340_v57 = vcombine.low %v284_v52, %v300_v49  ;;  %v341_v58 = vcombine.high %v284_v52, %v300_v49  ;;  %v356_v10 = vcombine.low %v291_v61, %v307_v56  ;;  %v357_v38 = vcombine.high %v291_v61, %v307_v56 }
  0xdb   : > { %v429_v49 = vcombine.high %v1626_v34, %v235_v55  ;;  %v476_v51 = vcombine.low %v420_v36, %v436_v37  ;;  %v339_v34 = vrot.slane %v325_v45, %v1636_v53  ;;  %v1682_v55 = vrot.slane %v413_v48, %v1606_v23 }
  0xdc   : > { %v348_v63 = vrot.slane %v340_v57, %v1636_v53  ;;  %v355_v18 = vrot.slane %v341_v58, %v1636_v53  ;;  %v364_v41 = vrot.slane %v356_v10, %v1636_v53  ;;  %v371_v54 = vrot.slane %v357_v38, %v1636_v53 }
  0xdd   : > { %v1663_v46 = vpop.permute.xlu0 %236  ;;  %v1669_v50 = vpop.permute.xlu1 %214  ;;  %v381_v58 = vcombine.high %v1554_v3, %v1588_v9  ;;  %v1685_v60 = vrot.slane %v429_v49, %v1606_v23  ;;  %v548_v61 = vcombine.low %v1624_v32, %v1653_v24  ;;  %v477_v3 = vcombine.high %v420_v36, %v436_v37 }
  0xde   : > { %v373_v14 = vcombine.high %v316_v62, %v348_v63  ;;  %v372_v17 = vcombine.low %v316_v62, %v348_v63  ;;  %v374_v39 = vcombine.low %v323_v35, %v355_v18  ;;  %v375_v42 = vcombine.high %v323_v35, %v355_v18 }
  0xdf   : > { %v376_v52 = vcombine.low %v332_v47, %v364_v41  ;;  %v564_v56 = vcombine.low %v1648_v13, %v1663_v46  ;;  %v377_v57 = vcombine.high %v332_v47, %v364_v41  ;;  %v378_v9 = vcombine.low %v339_v34, %v371_v54 }
  0xe0   : > { %824 = vperm.xlu1 %1287, %v373_v14   ;;  %821 = vperm.xlu0 %1286, %v372_v17   ;;  %v484_v8 = vrot.slane %v476_v51, %v1636_v53  ;;  %v379_v63 = vcombine.high %v339_v34, %v371_v54  ;;  %v1698_v4 = vrot.slane %v381_v58, %v1606_v23 }
  0xe1   : > { %v572_v62 = vrot.slane %v564_v56, %v1606_v23  ;;  %v1693_v5 = vpop.permute.xlu1 %238  ;;  %v1695_v21 = vpop.permute.xlu0 %226  ;;  %v1701_v6 = vrot.slane %v397_v59, %v1606_v23  ;;  %v445_v1 = vcombine.high %v388_v43, %v404_v44  ;;  %v452_v10 = vrot.slane %v444_v25, %v1636_v53 }
  0xe2   : > { %v540_v14 = vrot.slane %v532_v40, %v1606_v23  ;;  %v492_v0 = vcombine.low %v1682_v55, %v1685_v60  ;;  %v556_v12 = vrot.slane %v548_v61, %v1606_v23  ;;  %v700_v17 = vcombine.low %v1669_v50, %v1693_v5 }
  0xe3   : > { %v684_v18 = vcombine.low %v1622_v31, %v1695_v21  ;;  %v508_v22 = vcombine.low %v452_v10, %v484_v8  ;;  %v491_v26 = vrot.slane %v477_v3, %v1636_v53  ;;  %v524_v33 = vrot.slane %v516_v16, %v1606_v23 }
  0xe4   : > { %827 = vperm.xlu1 %1287, %v374_v39   ;;  %830 = vperm.xlu0 %1286, %v375_v42   ;;  %v612_v35 = vcombine.low %v556_v12, %v572_v62  ;;  %v509_v36 = vcombine.high %v452_v10, %v484_v8  ;;  %v652_v37 = vcombine.low %v1552_v2, %v1590_v11 }
  0xe5   : > { %v460_v38 = vcombine.low %v1698_v4, %v1701_v6  ;;  %v668_v39 = vcombine.low %v1584_v7, %v1599_v20  ;;  %v459_v41 = vrot.slane %v445_v1, %v1636_v53  ;;  %v580_v42 = vcombine.low %v524_v33, %v540_v14 }
  0xe6   : > { %v708_v43 = vrot.slane %v700_v17, %v1606_v23  ;;  %v692_v44 = vrot.slane %v684_v18, %v1606_v23  ;;  %v500_v47 = vrot.slane %v492_v0, %v1636_v53  ;;  %v613_v48 = vcombine.high %v556_v12, %v572_v62 }
  0xe7   : > { %v510_v45 = vcombine.low %v459_v41, %v491_v26  ;;  %v511_v49 = vcombine.high %v459_v41, %v491_v26  ;;  %v620_v51 = vrot.slane %v612_v35, %v1636_v53  ;;  %v676_v54 = vrot.slane %v668_v39, %v1606_v23 }
  0xe8   : > { %833 = vperm.xlu1 %1287, %v376_v52   ;;  %836 = vperm.xlu0 %1286, %v377_v57   ;;  %v660_v52 = vrot.slane %v652_v37, %v1606_v23  ;;  %v468_v56 = vrot.slane %v460_v38, %v1636_v53  ;;  %v581_v57 = vcombine.high %v524_v33, %v540_v14 }
  0xe9   : > { %v588_v58 = vrot.slane %v580_v42, %v1636_v53  ;;  %v565_v59 = vcombine.high %v1648_v13, %v1663_v46  ;;  %v748_v25 = vcombine.low %v692_v44, %v708_v43  ;;  %v627_v61 = vrot.slane %v613_v48, %v1636_v53 }
  0xea   : > { %v512_v34 = vcombine.low %v468_v56, %v500_v47  ;;  %v716_v3 = vcombine.low %v660_v52, %v676_v54  ;;  %v595_v8 = vrot.slane %v581_v57, %v1636_v53  ;;  %v749_v1 = vcombine.high %v692_v44, %v708_v43 }
  0xeb   : > { %v644_v40 = vcombine.low %v588_v58, %v620_v51  ;;  %v579_v16 = vrot.slane %v565_v59, %v1606_v23  ;;  %v645_v62 = vcombine.high %v588_v58, %v620_v51  ;;  %v717_v14 = vcombine.high %v660_v52, %v676_v54 }
  0xec   : > { %839 = vperm.xlu1 %1287, %v378_v9   ;;  %842 = vperm.xlu0 %1286, %v379_v63   ;;  %v549_v9 = vcombine.high %v1624_v32, %v1653_v24  ;;  %v756_v63 = vrot.slane %v748_v25, %v1636_v53  ;;  %v646_v13 = vcombine.low %v595_v8, %v627_v61 }
  0xed   : > { %v724_v10 = vrot.slane %v716_v3, %v1636_v53  ;;  %v701_v24 = vcombine.high %v1669_v50, %v1693_v5  ;;  %v685_v12 = vcombine.high %v1622_v31, %v1695_v21  ;;  %v763_v18 = vrot.slane %v749_v1, %v1636_v53 }
  0xee   : > { %v563_v46 = vrot.slane %v549_v9, %v1606_v23  ;;  %v669_v26 = vcombine.high %v1584_v7, %v1599_v20  ;;  %v731_v33 = vrot.slane %v717_v14, %v1636_v53  ;;  %v493_v35 = vcombine.high %v1682_v55, %v1685_v60 }
  0xef   : > { %v780_v32 = vcombine.low %v724_v10, %v756_v63  ;;  %v781_v17 = vcombine.high %v724_v10, %v756_v63  ;;  %v647_v50 = vcombine.high %v595_v8, %v627_v61  ;;  %v715_v5 = vrot.slane %v701_v24, %v1606_v23 }
  0xf0   : > { %845 = vperm.xlu1 %1287, %v508_v22   ;;  %848 = vperm.xlu0 %1286, %v509_v36   ;;  %v628_v0 = vcombine.low %v563_v46, %v579_v16  ;;  %v653_v22 = vcombine.high %v1552_v2, %v1590_v11  ;;  %v699_v31 = vrot.slane %v685_v12, %v1606_v23 }
  0xf1   : > { %v782_v21 = vcombine.low %v731_v33, %v763_v18  ;;  %v461_v7 = vcombine.high %v1698_v4, %v1701_v6  ;;  %v683_v11 = vrot.slane %v669_v26, %v1606_v23  ;;  %v604_v20 = vrot.slane %v596_v29, %v1636_v53 }
  0xf2   : > { %v636_v36 = vrot.slane %v628_v0, %v1636_v53  ;;  %v667_v2 = vrot.slane %v653_v22, %v1606_v23  ;;  %v513_v55 = vcombine.high %v468_v56, %v500_v47  ;;  %v764_v60 = vcombine.low %v699_v31, %v715_v5 }
  0xf3   : > { %v507_v38 = vrot.slane %v493_v35, %v1636_v53  ;;  %v475_v41 = vrot.slane %v461_v7, %v1636_v53  ;;  %v783_v42 = vcombine.high %v731_v33, %v763_v18  ;;  %v629_v4 = vcombine.high %v563_v46, %v579_v16 }
  0xf4   : > { %851 = vperm.xlu1 %1287, %v510_v45   ;;  %854 = vperm.xlu0 %1286, %v511_v49   ;;  %v648_v37 = vcombine.low %v604_v20, %v636_v36  ;;  %v732_v39 = vcombine.low %v667_v2, %v683_v11  ;;  %v772_v23 = vrot.slane %v764_v60, %v1636_v53 }
  0xf5   : > { %v514_v6 = vcombine.low %v475_v41, %v507_v38  ;;  %v649_v29 = vcombine.high %v604_v20, %v636_v36  ;;  %v643_v45 = vrot.slane %v629_v4, %v1636_v53  ;;  %v611_v47 = vrot.slane %v597_v30, %v1636_v53 }
  0xf6   : > { %v740_v43 = vrot.slane %v732_v39, %v1636_v53  ;;  %v765_v48 = vcombine.high %v699_v31, %v715_v5  ;;  %v515_v49 = vcombine.high %v475_v41, %v507_v38  ;;  %v733_v52 = vcombine.high %v667_v2, %v683_v11 }
  0xf7   : > { %v650_v51 = vcombine.low %v611_v47, %v643_v45  ;;  %v651_v57 = vcombine.high %v611_v47, %v643_v45 }
  0xf8   : > { %857 = vperm.xlu1 %1287, %v512_v34   ;;  %869 = vperm.xlu0 %1286, %v644_v40   ;;  %v784_v44 = vcombine.low %v740_v43, %v772_v23  ;;  %v785_v54 = vcombine.high %v740_v43, %v772_v23  ;;  %v779_v56 = vrot.slane %v765_v48, %v1636_v53 }
  0xf9   : > { %v747_v58 = vrot.slane %v733_v52, %v1636_v53 }
  0xfb   : > { %v786_v59 = vcombine.low %v747_v58, %v779_v56  ;;  %v787_v25 = vcombine.high %v747_v58, %v779_v56 }
  0xfc   : > { %872 = vperm.xlu1 %1287, %v645_v62   ;;  %875 = vperm.xlu0 %1286, %v646_v13   ;;  %v917_v13 = vand.u32 127, %v249_v15 }
  0xfe   : > { %v922_v14 = vadd.s32 4294967288, %v917_v13  ;;  %v936_v18 = vadd.s32 4294967272, %v917_v13  ;;  %v943_v26 = vadd.s32 4294967264, %v917_v13  ;;  %v950_v31 = vadd.s32 4294967256, %v917_v13 }
  0xff   : > { %v957_v41 = vadd.s32 4294967248, %v917_v13 }
 0x100   : > { %893 = vperm.xlu1 %1287, %v780_v32   ;;  %896 = vperm.xlu0 %1286, %v781_v17   ;;  %v929_v32 = vadd.s32 4294967280, %v917_v13  ;;  %v1791_v12 = vsub.s32 %v922_v14, %v1597_v19  ;;  %v1794_v17 = vsub.s32 %v917_v13, %v1597_v19  ;;  %v1806_v5 = vsub.s32 %v936_v18, %v1597_v19 }
 0x101   : > { %v1812_v2 = vsub.s32 %v943_v26, %v1597_v19 }
 0x102   : > { %v1799_v15 = vsub.s32 %v929_v32, %v1597_v19 }
 0x104   : > { %878 = vperm.xlu1 %1287, %v647_v50   ;;  %899 = vperm.xlu0 %1286, %v782_v21  }
 0x108   : > { %860 = vperm.xlu1 %1287, %v513_v55   ;;  %881 = vperm.xlu0 %1286, %v648_v37   ;;  %v1817_v55 = vsub.s32 %v950_v31, %v1597_v19 }
 0x10c   : > { %902 = vperm.xlu1 %1287, %v783_v42   ;;  %863 = vperm.xlu0 %1286, %v514_v6   ;;  %v964_v42 = vadd.s32 4294967240, %v917_v13 }
 0x110   : > { %884 = vperm.xlu1 %1287, %v649_v29   ;;  %905 = vperm.xlu0 %1286, %v784_v44  }
 0x114   : > { %866 = vperm.xlu1 %1287, %v515_v49   ;;  %887 = vperm.xlu0 %1286, %v650_v51   ;;  %v960_v49 = vsub.s32 %v957_v41, %v1597_v19  ;;  %v1833_v51 = vsub.s32 %v964_v42, %v1597_v19 }
 0x118   : > { %908 = vperm.xlu1 %1287, %v785_v54   ;;  %890 = vperm.xlu0 %1286, %v651_v57  }
 0x11c   : > { %911 = vperm.xlu1 %1287, %v786_v59   ;;  %914 = vperm.xlu0 %1286, %v787_v25  }
 0x15f   : > { %v825_v27 = vpop.permute.xlu1 %824  ;;  %v822_v28 = vpop.permute.xlu0 %821 }
 0x160   : > { %v926_v35 = vrot.slane %v825_v27, %v1791_v12  ;;  %v921_v50 = vrot.slane %v822_v28, %v1794_v17 }
 0x162   : > { %v928_v11 = vsel %vm927_vm0, %v926_v35, %v921_v50 }
 0x163   : > { %v828_v30 = vpop.permute.xlu1 %827  ;;  %v831_v34 = vpop.permute.xlu0 %830 }
 0x164   : > { %v933_v36 = vrot.slane %v828_v30, %v1799_v15  ;;  %v940_v20 = vrot.slane %v831_v34, %v1806_v5 }
 0x166   : > { %v935_v37 = vsel %vm934_vm1, %v933_v36, %v928_v11 }
 0x167   : > { %v834_v40 = vpop.permute.xlu1 %833  ;;  %v1773_v61 = vpop.permute.xlu0 %836  ;;  %v942_v23 = vsel %vm941_vm2, %v940_v20, %v935_v37 }
 0x168   : > { %v947_v38 = vrot.slane %v834_v40, %v1812_v2  ;;  %v954_v43 = vrot.slane %v1773_v61, %v1817_v55 }
 0x16a   : > { %v949_v45 = vsel %vm948_vm3, %v947_v38, %v942_v23 }
 0x16b   : > { %v1775_v3 = vpop.permute.xlu1 %839  ;;  %v1777_v9 = vpop.permute.xlu0 %842  ;;  %v956_v57 = vsel %vm955_vm4, %v954_v43, %v949_v45 }
 0x16c   : > { %v961_v61 = vrot.slane %v1775_v3, %v960_v49 }
 0x16f   : > { %v846_v8 = vpop.permute.xlu1 %845  ;;  %v849_v16 = vpop.permute.xlu0 %848 }
 0x170   : > { %v974_v4 = vrot.slane %v846_v8, %v1794_v17  ;;  %v978_v6 = vrot.slane %v849_v16, %v1791_v12  ;;  %v968_v8 = vrot.slane %v1777_v9, %v1833_v51 }
 0x172   : > { %v979_v52 = vsel %vm927_vm0, %v978_v6, %v974_v4 }
 0x173   : > { %v852_v62 = vpop.permute.xlu1 %851  ;;  %v1779_v53 = vpop.permute.xlu0 %854 }
 0x174   : > { %v983_v29 = vrot.slane %v852_v62, %v1799_v15  ;;  %v988_v54 = vrot.slane %v1779_v53, %v1806_v5 }
 0x176   : > { %v984_v58 = vsel %vm934_vm1, %v983_v29, %v979_v52 }
 0x177   : > { %v1781_v63 = vpop.permute.xlu1 %857  ;;  %v870_v1 = vpop.permute.xlu0 %869  ;;  %v989_v53 = vsel %vm941_vm2, %v988_v54, %v984_v58 }
 0x178   : > { %v1013_v56 = vrot.slane %v870_v1, %v1794_v17  ;;  %v993_v59 = vrot.slane %v1781_v63, %v1812_v2 }
 0x17b   : > { %v873_v46 = vpop.permute.xlu1 %872  ;;  %v1784_v10 = vpop.permute.xlu0 %875 }
 0x17c   : > { %v1017_v47 = vrot.slane %v873_v46, %v1791_v12  ;;  %v1022_v25 = vrot.slane %v1784_v10, %v1799_v15 }
 0x17e   : > { %v1018_v27 = vsel %vm927_vm0, %v1017_v47, %v1013_v56 }
 0x17f   : > { %v1786_v0 = vpop.permute.xlu1 %893  ;;  %v1788_v24 = vpop.permute.xlu0 %896  ;;  %v1023_v46 = vsel %vm934_vm1, %v1022_v25, %v1018_v27 }
 0x180   : > { %v1052_v28 = vrot.slane %v1786_v0, %v1794_v17  ;;  %v1056_v30 = vrot.slane %v1788_v24, %v1791_v12  ;;  %v994_v0 = vsel %vm948_vm3, %v993_v59, %v989_v53 }
 0x182   : > { %v1057_v32 = vsel %vm927_vm0, %v1056_v30, %v1052_v28 }
 0x183   : > { %v1796_v22 = vpop.permute.xlu1 %878  ;;  %v1801_v33 = vpop.permute.xlu0 %899 }
 0x184   : > { %v1027_v34 = vrot.slane %v1796_v22, %v1806_v5  ;;  %v1061_v63 = vrot.slane %v1801_v33, %v1799_v15  ;;  %v963_v33 = vsel %vm962_vm5, %v961_v61, %v956_v57 }
 0x186   : > { %v1028_v24 = vsel %vm941_vm2, %v1027_v34, %v1023_v46  ;;  %v1062_v35 = vsel %vm934_vm1, %v1061_v63, %v1057_v32 }
 0x187   : > { %v1808_v21 = vpop.permute.xlu1 %860  ;;  %v882_v7 = vpop.permute.xlu0 %881 }
 0x188   : > { %v998_v16 = vrot.slane %v1808_v21, %v1817_v55  ;;  %v1032_v62 = vrot.slane %v882_v7, %v1812_v2 }
 0x18a   : > { %v999_v18 = vsel %vm955_vm4, %v998_v16, %v994_v0  ;;  %v1033_v22 = vsel %vm948_vm3, %v1032_v62, %v1028_v24 }
 0x18b   : > { %v1819_v60 = vpop.permute.xlu1 %902  ;;  %v864_v39 = vpop.permute.xlu0 %863 }
 0x18c   : > { %v1003_v1 = vrot.slane %v864_v39, %v960_v49  ;;  %v1066_v3 = vrot.slane %v1819_v60, %v1806_v5  ;;  %v970_v60 = vsel %vm969_vm6, %v968_v8, %v963_v33 }
 0x18e   : > { %v1004_v50 = vsel %vm962_vm5, %v1003_v1, %v999_v18  ;;  %v1067_v31 = vsel %vm941_vm2, %v1066_v3, %v1062_v35 }
 0x18f   : > { %v885_v44 = vpop.permute.xlu1 %884  ;;  %v906_v48 = vpop.permute.xlu0 %905 }
 0x190   : > { %v1037_v13 = vrot.slane %v885_v44, %v1817_v55  ;;  %v1071_v12 = vrot.slane %v906_v48, %v1812_v2 }
 0x192   : > { %v1038_v5 = vsel %vm955_vm4, %v1037_v13, %v1033_v22  ;;  %v1072_v7 = vsel %vm948_vm3, %v1071_v12, %v1067_v31 }
 0x193   : > { %v867_v19 = vpop.permute.xlu1 %866  ;;  %v888_v40 = vpop.permute.xlu0 %887 }
 0x194   : > { %v1008_v9 = vrot.slane %v867_v19, %v1833_v51  ;;  %v1042_v10 = vrot.slane %v888_v40, %v960_v49 }
 0x196   : > { %v1009_v21 = vsel %vm969_vm6, %v1008_v9, %v1004_v50  ;;  %v1043_v36 = vsel %vm962_vm5, %v1042_v10, %v1038_v5 }
 0x197   : > { %v909_v14 = vpop.permute.xlu1 %908  ;;  %v891_v17 = vpop.permute.xlu0 %890  ;;  %v1089_v39 = vsel %vm1088_vm7, %v1009_v21, %v970_v60 }
 0x198   : > { %v1076_v15 = vrot.slane %v909_v14, %v1817_v55  ;;  %v1047_v26 = vrot.slane %v891_v17, %v1833_v51 }
 0x19a   : > { %v1048_v11 = vsel %vm969_vm6, %v1047_v26, %v1043_v36  ;;  %v1077_v37 = vsel %vm955_vm4, %v1076_v15, %v1072_v7 }
 0x19b   : > { %v912_v2 = vpop.permute.xlu1 %911  ;;  %v915_v55 = vpop.permute.xlu0 %914  ;;  %v1091_v42 = vsel %vm1090_vm8, %v1048_v11, %v1089_v39 }
 0x19c   : > { %v1081_v20 = vrot.slane %v912_v2, %v960_v49  ;;  %v1086_v38 = vrot.slane %v915_v55, %v1833_v51 }
 0x19e   : > { %v1082_v41 = vsel %vm962_vm5, %v1081_v20, %v1077_v37 }
 0x19f   : > { %v1087_v4 = vsel %vm969_vm6, %v1086_v38, %v1082_v41 }
 0x1a0   : > { %v1093_v6 = vsel %vm1092_vm9, %v1087_v4, %v1091_v42 }
 0x1a1   : > { %v1096_v23 = vsel %vm1095_vm10, 0.0, %v1093_v6 }
 0x1a2   : > { %v1098_v43 = vsel %vm1097_vm11, %v1096_v23, 0.0 }
 0x1a3   : > { %1100 = vst.msk [vmem:[%s151_s16] sm:$0xff] %vm1099_vm12, %v1098_v43 }
 0x1a4   : > { %1331 = shalt.err (!%p1328_p5)
}
 0x1a5   : > { %s1332_s26 = scalar_lea.hbm %s1893_s24, 128  ;;  %s1336_s18 = scalar_lea.hbm %s1943_s1, 256 }
 0x1a6   : > { %p1333_p4 = scmp.ne.s32.totalorder %s1893_s24, %s1332_s26  ;;  %p1337_p12 = scmp.lt.u32.totalorder %s1893_s24, %s1943_s1 }
 0x1a7   : > { %p1338_p1 = scmp.lt.u32.totalorder %s1336_s18, %s1332_s26  ;;  %p1340_p8 = scmp.lt.u32.totalorder %s1332_s26, %s1893_s24 }
 0x1a8   : > { %p1334_p7 = pnand %p1333_p4, %p1951_p9 }
 0x1a9   : > { %p1339_p3 = por %p1338_p1, %p1337_p12 }
 0x1aa   : > { %p1335_p10 = pneg %p1334_p7 }
 0x1ab   : > { %p1341_p11 = por %p1340_p8, %p1339_p3 }
 0x1ad   : > { %p1342_p0 = pnand %p1341_p11, %p1335_p10 }
 0x1af   : > { %1345 = shalt.err (!%p1342_p0)
}
 0x1b0   : > { %1214 = dma.vmem_to_hbm [thread:$0]  (%p1951_p9), %s1895_s17, 128, %s1893_s24, %s1102_s9  }
 0x1b1 PF: > { %s1128_s5 = sand.u32 1, %s1380_s6   ;;  %p1952_p6 = scmp.ne.s32.totalorder %s1948_s21, 0 }
 0x1b2   : > { %p1953_p13 = scmp.ge.s32.totalorder %s1400_s11, 2  ;;  %s1129_s12 = scalar_lea.sflag [#allocation4], %s1128_s5 }
 0x1b4   : > { %p1221_p2 = pnand %p1953_p13, %p1952_p6 }
 0x1b6   : > { %1375 = dma.done.wait (!%p1221_p2), %s1129_s12, 128  }
 0x1b7   : > { %1377 = vsyncadd (!%p1221_p2), %s1129_s12, 4294967168  ;;  %s17_s11 = sadd.s32 1, %s1400_s11   ;;  %s1954_s6 = smov %s1384_s7 }
 0x1b8   : > { %p14_p5 = scmp.ge.s32.totalorder %s17_s11, 4   ;;  %s1955_s7 = smov %s1388_s8 }
 0x1b9   : > { %s1956_s8 = smov %s1482_s20  ;;  %s1957_s9 = smov %s1396_s10 }
 0x1ba   : > { %s1958_s10 = smov %s1960_s14  ;;  %16 = sbr.rel (!%p14_p5) target bundleno = 6 (0x6), region = 69 }
 0x1c1   :  { %1134 = vsyncpa [#allocation3], 1 }
 0x1c2   :  { %1136 = vsyncpa [#allocation3 + $0x1], 1 }
 0x1c3   :  { %1137 = vsyncpa [#allocation4], 1 }
 0x1c4   :  { %1139 = vsyncpa [#allocation4 + $0x1], 1 }

</bundles_post_ra>
